<compile_context>
chip_gen: v7x
topology: tpu7x:2x2x1
jax: 0.10.0
libtpu: 0.0.40
codegen_flags: <defaults>
</compile_context>

<pallas_src>
import functools

import jax
import jax.numpy as jnp
from jax.experimental import pallas as pl
from jax.experimental.pallas import tpu as pltpu


def _round_up(x, m):
    return ((x + m - 1) // m) * m


def _critic_kernel(x_ref, a_ref,
                   w1_ref, b1_ref,
                   w2o_ref, w2a_ref, b2_ref,
                   w3_ref, b3_ref,
                   out_ref):
    # Layer 1: Linear(obs, 256) + ReLU.  bf16 MXU inputs, f32 accumulate,
    # bias + ReLU in f32.
    h1 = jnp.dot(x_ref[...].astype(jnp.bfloat16), w1_ref[...],
                 preferred_element_type=jnp.float32)
    h1 = jnp.maximum(h1 + b1_ref[...], 0.0)

    # Layer 2: Linear(256 + act, 128) + ReLU, with the concat split into
    #   h1 @ W2_obs  (MXU, bf16 in / f32 acc)
    # + a  @ W2_act  (K = act_size is tiny -> unrolled VPU broadcast-FMAs,
    #                 rides otherwise-idle VALU slots, avoids a degenerate
    #                 sub-8-sublane MXU matmul).
    h2 = jnp.dot(h1.astype(jnp.bfloat16), w2o_ref[...],
                 preferred_element_type=jnp.float32)
    a_f32 = a_ref[...]
    for k in range(w2a_ref.shape[0]):          # static trip count -> unrolled
        h2 = h2 + a_f32[:, k:k + 1] * w2a_ref[k:k + 1, :]
    h2 = jnp.maximum(h2 + b2_ref[...], 0.0)

    # Layer 3: Linear(128, n_atoms_padded).  Lane-dense (multiple-of-128) output.
    logits = jnp.dot(h2.astype(jnp.bfloat16), w3_ref[...],
                     preferred_element_type=jnp.float32)
    out_ref[...] = (logits + b3_ref[...]).astype(out_ref.dtype)


@functools.partial(jax.jit, static_argnames=("block_b",))
def d4pg_critic_forward(x, a, params, block_b=1024):
    """D4PGCritic forward pass (atom logits) as one batch-tiled Pallas kernel.

    x: (B, obs_size) f32, a: (B, act_size) f32.
    params: dict of pre-transposed (in, out) weights and (1, out) biases.
    Returns (B, n_atoms) f32 logits.
    """
    B, obs = x.shape
    act = a.shape[1]
    h1_dim = params["w1"].shape[1]
    h2_dim = params["w2_obs"].shape[1]
    n_atoms = params["w3"].shape[1]

    # Lane-dense output: zero-pad n_atoms up to a multiple of 128.
    n_pad = _round_up(n_atoms, 128)
    w3 = jnp.pad(params["w3"], ((0, 0), (0, n_pad - n_atoms))).astype(jnp.bfloat16)
    b3 = jnp.pad(params["b3"], ((0, 0), (0, n_pad - n_atoms)))

    # bf16 operands for the MXU matmuls (f32 accumulation in-kernel).
    # W2_act stays f32: it is consumed on the VPU (broadcast-FMAs), not the MXU.
    w1 = params["w1"].astype(jnp.bfloat16)
    w2o = params["w2_obs"].astype(jnp.bfloat16)
    w2a = params["w2_act"]
    b1, b2 = params["b1"], params["b2"]

    # Batch tiling: big tiles amortize per-step overhead; small batches stay a
    # single grid point. Pad B up to a whole number of tiles.
    tb = min(block_b, _round_up(B, 8))
    b_pad = _round_up(B, tb)
    if b_pad != B:
        x = jnp.pad(x, ((0, b_pad - B), (0, 0)))
        a = jnp.pad(a, ((0, b_pad - B), (0, 0)))
    grid = (b_pad // tb,)

    def const_spec(shape):
        return pl.BlockSpec(shape, lambda i: (0, 0))   # weights: VMEM-resident

    in_specs = [
        pl.BlockSpec((tb, obs), lambda i: (i, 0)),     # x tile
        pl.BlockSpec((tb, act), lambda i: (i, 0)),     # a tile
        const_spec((obs, h1_dim)),                     # w1 (bf16)
        const_spec((1, h1_dim)),                       # b1
        const_spec((h1_dim, h2_dim)),                  # w2_obs (bf16)
        const_spec((act, h2_dim)),                     # w2_act (f32, VPU)
        const_spec((1, h2_dim)),                       # b2
        const_spec((h2_dim, n_pad)),                   # w3 (bf16, padded)
        const_spec((1, n_pad)),                        # b3 (padded)
    ]
    out_spec = pl.BlockSpec((tb, n_pad), lambda i: (i, 0))

    flops = 2 * b_pad * (obs * h1_dim + h1_dim * h2_dim
                         + act * h2_dim + h2_dim * n_pad)
    bytes_accessed = (
        4 * b_pad * (obs + act + n_pad)                           # activations
        + 2 * (obs * h1_dim + h1_dim * h2_dim + h2_dim * n_pad)   # bf16 weights
        + 4 * (act * h2_dim + h1_dim + h2_dim + n_pad)            # f32 w2a + biases
    )

    out = pl.pallas_call(
        _critic_kernel,
        out_shape=jax.ShapeDtypeStruct((b_pad, n_pad), jnp.float32),
        grid=grid,
        in_specs=in_specs,
        out_specs=out_spec,
        compiler_params=pltpu.CompilerParams(
            dimension_semantics=("parallel",)),
        cost_estimate=pl.CostEstimate(
            flops=int(flops), transcendentals=0,
            bytes_accessed=int(bytes_accessed)),
    )(x, a, w1, b1, w2o, w2a, b2, w3, b3)

    return out[:B, :n_atoms]


def init_params(key, obs_size, act_size, n_atoms, hidden1=256, hidden2=128):
    """PyTorch Linear default init: U(-1/sqrt(fan_in), 1/sqrt(fan_in)).
    Weights stored transposed: (in_features, out_features)."""
    ks = jax.random.split(key, 6)

    def lin(kw, kb, fan_in, fan_out):
        bound = 1.0 / jnp.sqrt(jnp.float32(fan_in))
        w = jax.random.uniform(kw, (fan_in, fan_out), jnp.float32, -bound, bound)
        b = jax.random.uniform(kb, (1, fan_out), jnp.float32, -bound, bound)
        return w, b

    w1, b1 = lin(ks[0], ks[1], obs_size, hidden1)
    w2, b2 = lin(ks[2], ks[3], hidden1 + act_size, hidden2)
    w3, b3 = lin(ks[4], ks[5], hidden2, n_atoms)

    return {
        "w1": w1, "b1": b1,
        # split the (hidden1 + act_size, hidden2) weight -> no in-kernel concat
        "w2_obs": w2[:hidden1, :], "w2_act": w2[hidden1:, :], "b2": b2,
        "w3": w3, "b3": b3,
    }


def reference_forward(x, a, params):
    """Plain-JAX (f32) reference matching the PyTorch module semantics."""
    h1 = jax.nn.relu(x @ params["w1"] + params["b1"])
    cat = jnp.concatenate([h1, a], axis=1)
    w2 = jnp.concatenate([params["w2_obs"], params["w2_act"]], axis=0)
    h2 = jax.nn.relu(cat @ w2 + params["b2"])
    return h2 @ params["w3"] + params["b3"]


if __name__ == "__main__":
    # Small, module-consistent shapes.
    B, OBS, ACT, N_ATOMS = 8, 32, 4, 51
    V_MIN, V_MAX = -10.0, 10.0
    delta = (V_MAX - V_MIN) / (N_ATOMS - 1)
    supports = jnp.arange(V_MIN, V_MAX + delta, delta, dtype=jnp.float32)[:N_ATOMS]
    # TODO(synk): distr_to_q (softmax * supports) is left to the caller; forward() only returns logits.

    key = jax.random.PRNGKey(0)
    kp, kx, ka = jax.random.split(key, 3)
    params = init_params(kp, OBS, ACT, N_ATOMS)

    # Test 1: single grid point (tiny batch).
    x = jax.random.normal(kx, (B, OBS), jnp.float32)
    a = jax.random.normal(ka, (B, ACT), jnp.float32)
    out = jax.block_until_ready(d4pg_critic_forward(x, a, params))
    ref = reference_forward(x, a, params)
    assert out.shape == (B, N_ATOMS)
    # bf16 MXU operands with f32 accumulation -> loosened tolerance vs f32 reference.
    assert jnp.allclose(out, ref, atol=2e-2, rtol=2e-2), "mismatch vs reference (B=8)"

    # Test 2: multi-step grid with batch padding (B=24, TB=8 -> grid=(3,)).
    B2 = 24
    kx2, ka2 = jax.random.split(jax.random.PRNGKey(1))
    x2 = jax.random.normal(kx2, (B2, OBS), jnp.float32)
    a2 = jax.random.normal(ka2, (B2, ACT), jnp.float32)
    out2 = jax.block_until_ready(d4pg_critic_forward(x2, a2, params, block_b=8))
    ref2 = reference_forward(x2, a2, params)
    assert out2.shape == (B2, N_ATOMS)
    assert jnp.allclose(out2, ref2, atol=2e-2, rtol=2e-2), "mismatch vs reference (B=24)"

    print("KERNEL_OK")
</pallas_src>

<mosaic_0001>
module attributes {stable_mosaic.version = 11 : i64} {
  func.func @_critic_kernel(%arg0: i32, %arg1: memref<8x32xf32, #tpu.memory_space<vmem>>, %arg2: memref<8x4xf32, #tpu.memory_space<vmem>>, %arg3: memref<32x256xbf16, #tpu.memory_space<vmem>>, %arg4: memref<1x256xf32, #tpu.memory_space<vmem>>, %arg5: memref<256x128xbf16, #tpu.memory_space<vmem>>, %arg6: memref<4x128xf32, #tpu.memory_space<vmem>>, %arg7: memref<1x128xf32, #tpu.memory_space<vmem>>, %arg8: memref<128x128xbf16, #tpu.memory_space<vmem>>, %arg9: memref<1x128xf32, #tpu.memory_space<vmem>>, %arg10: memref<8x128xf32, #tpu.memory_space<vmem>>) attributes {dimension_semantics = [#tpu.dimension_semantics<parallel>], iteration_bounds = array<i64: 1>, scalar_prefetch = 0 : i64, scratch_operands = 0 : i64, tpu.core_type = #tpu.core_type<tc>, window_params = [{transform_indices = @transform_0, window_bounds = array<i64: 8, 32>}, {transform_indices = @transform_1, window_bounds = array<i64: 8, 4>}, {pipeline_mode = #tpu.pipeline_mode<synchronous>, transform_indices = @transform_2, window_bounds = array<i64: 32, 256>}, {pipeline_mode = #tpu.pipeline_mode<synchronous>, transform_indices = @transform_3, window_bounds = array<i64: 1, 256>}, {pipeline_mode = #tpu.pipeline_mode<synchronous>, transform_indices = @transform_4, window_bounds = array<i64: 256, 128>}, {pipeline_mode = #tpu.pipeline_mode<synchronous>, transform_indices = @transform_5, window_bounds = array<i64: 4, 128>}, {pipeline_mode = #tpu.pipeline_mode<synchronous>, transform_indices = @transform_6, window_bounds = array<i64: 1, 128>}, {pipeline_mode = #tpu.pipeline_mode<synchronous>, transform_indices = @transform_7, window_bounds = array<i64: 128, 128>}, {pipeline_mode = #tpu.pipeline_mode<synchronous>, transform_indices = @transform_8, window_bounds = array<i64: 1, 128>}, {transform_indices = @transform_9, window_bounds = array<i64: 8, 128>}]} {
    %c0 = arith.constant 0 : index
    %c0_0 = arith.constant 0 : index
    %0 = vector.load %arg1[%c0, %c0_0] : memref<8x32xf32, #tpu.memory_space<vmem>>, vector<8x32xf32>
    %1 = arith.truncf %0 : vector<8x32xf32> to vector<8x32xbf16>
    %c0_1 = arith.constant 0 : index
    %c0_2 = arith.constant 0 : index
    %2 = vector.load %arg3[%c0_1, %c0_2] : memref<32x256xbf16, #tpu.memory_space<vmem>>, vector<32x256xbf16>
    %cst = arith.constant dense<0.000000e+00> : vector<8x256xf32>
    %3 = tpu.matmul %1, %2, %cst {dimension_numbers = #tpu.dot_dimension_numbers<[1], [0], [0], [1], [0, 0, 1, 1], [], []>} : vector<8x32xbf16>, vector<32x256xbf16>, vector<8x256xf32> -> vector<8x256xf32>
    %c0_3 = arith.constant 0 : index
    %c0_4 = arith.constant 0 : index
    %4 = vector.load %arg4[%c0_3, %c0_4] : memref<1x256xf32, #tpu.memory_space<vmem>>, vector<1x256xf32>
    %5 = vector.broadcast %4 : vector<1x256xf32> to vector<8x256xf32>
    %6 = arith.addf %3, %5 : vector<8x256xf32>
    %cst_5 = arith.constant 0.000000e+00 : f32
    %7 = vector.broadcast %cst_5 : f32 to vector<8x256xf32>
    %8 = arith.maximumf %6, %7 : vector<8x256xf32>
    %9 = arith.truncf %8 : vector<8x256xf32> to vector<8x256xbf16>
    %c0_6 = arith.constant 0 : index
    %c0_7 = arith.constant 0 : index
    %10 = vector.load %arg5[%c0_6, %c0_7] : memref<256x128xbf16, #tpu.memory_space<vmem>>, vector<256x128xbf16>
    %cst_8 = arith.constant dense<0.000000e+00> : vector<8x128xf32>
    %11 = tpu.matmul %9, %10, %cst_8 {dimension_numbers = #tpu.dot_dimension_numbers<[1], [0], [0], [1], [0, 0, 1, 1], [], []>} : vector<8x256xbf16>, vector<256x128xbf16>, vector<8x128xf32> -> vector<8x128xf32>
    %c0_9 = arith.constant 0 : index
    %c0_10 = arith.constant 0 : index
    %12 = vector.load %arg2[%c0_9, %c0_10] : memref<8x4xf32, #tpu.memory_space<vmem>>, vector<8x4xf32>
    %13 = vector.extract_strided_slice %12 {offsets = [0, 0], sizes = [8, 1], strides = [1, 1]} : vector<8x4xf32> to vector<8x1xf32>
    %c0_11 = arith.constant 0 : index
    %c0_12 = arith.constant 0 : index
    %14 = vector.load %arg6[%c0_11, %c0_12] : memref<4x128xf32, #tpu.memory_space<vmem>>, vector<1x128xf32>
    %15 = vector.broadcast %13 : vector<8x1xf32> to vector<8x128xf32>
    %16 = vector.broadcast %14 : vector<1x128xf32> to vector<8x128xf32>
    %17 = arith.mulf %15, %16 : vector<8x128xf32>
    %18 = arith.addf %11, %17 : vector<8x128xf32>
    %19 = vector.extract_strided_slice %12 {offsets = [0, 1], sizes = [8, 1], strides = [1, 1]} : vector<8x4xf32> to vector<8x1xf32>
    %c1 = arith.constant 1 : index
    %c0_13 = arith.constant 0 : index
    %20 = vector.load %arg6[%c1, %c0_13] : memref<4x128xf32, #tpu.memory_space<vmem>>, vector<1x128xf32>
    %21 = vector.broadcast %19 : vector<8x1xf32> to vector<8x128xf32>
    %22 = vector.broadcast %20 : vector<1x128xf32> to vector<8x128xf32>
    %23 = arith.mulf %21, %22 : vector<8x128xf32>
    %24 = arith.addf %18, %23 : vector<8x128xf32>
    %25 = vector.extract_strided_slice %12 {offsets = [0, 2], sizes = [8, 1], strides = [1, 1]} : vector<8x4xf32> to vector<8x1xf32>
    %c2 = arith.constant 2 : index
    %c0_14 = arith.constant 0 : index
    %26 = vector.load %arg6[%c2, %c0_14] : memref<4x128xf32, #tpu.memory_space<vmem>>, vector<1x128xf32>
    %27 = vector.broadcast %25 : vector<8x1xf32> to vector<8x128xf32>
    %28 = vector.broadcast %26 : vector<1x128xf32> to vector<8x128xf32>
    %29 = arith.mulf %27, %28 : vector<8x128xf32>
    %30 = arith.addf %24, %29 : vector<8x128xf32>
    %31 = vector.extract_strided_slice %12 {offsets = [0, 3], sizes = [8, 1], strides = [1, 1]} : vector<8x4xf32> to vector<8x1xf32>
    %c3 = arith.constant 3 : index
    %c0_15 = arith.constant 0 : index
    %32 = vector.load %arg6[%c3, %c0_15] : memref<4x128xf32, #tpu.memory_space<vmem>>, vector<1x128xf32>
    %33 = vector.broadcast %31 : vector<8x1xf32> to vector<8x128xf32>
    %34 = vector.broadcast %32 : vector<1x128xf32> to vector<8x128xf32>
    %35 = arith.mulf %33, %34 : vector<8x128xf32>
    %36 = arith.addf %30, %35 : vector<8x128xf32>
    %c0_16 = arith.constant 0 : index
    %c0_17 = arith.constant 0 : index
    %37 = vector.load %arg7[%c0_16, %c0_17] : memref<1x128xf32, #tpu.memory_space<vmem>>, vector<1x128xf32>
    %38 = vector.broadcast %37 : vector<1x128xf32> to vector<8x128xf32>
    %39 = arith.addf %36, %38 : vector<8x128xf32>
    %cst_18 = arith.constant 0.000000e+00 : f32
    %40 = vector.broadcast %cst_18 : f32 to vector<8x128xf32>
    %41 = arith.maximumf %39, %40 : vector<8x128xf32>
    %42 = arith.truncf %41 : vector<8x128xf32> to vector<8x128xbf16>
    %c0_19 = arith.constant 0 : index
    %c0_20 = arith.constant 0 : index
    %43 = vector.load %arg8[%c0_19, %c0_20] : memref<128x128xbf16, #tpu.memory_space<vmem>>, vector<128x128xbf16>
    %cst_21 = arith.constant dense<0.000000e+00> : vector<8x128xf32>
    %44 = tpu.matmul %42, %43, %cst_21 {dimension_numbers = #tpu.dot_dimension_numbers<[1], [0], [0], [1], [0, 0, 1, 1], [], []>} : vector<8x128xbf16>, vector<128x128xbf16>, vector<8x128xf32> -> vector<8x128xf32>
    %c0_22 = arith.constant 0 : index
    %c0_23 = arith.constant 0 : index
    %45 = vector.load %arg9[%c0_22, %c0_23] : memref<1x128xf32, #tpu.memory_space<vmem>>, vector<1x128xf32>
    %46 = vector.broadcast %45 : vector<1x128xf32> to vector<8x128xf32>
    %47 = arith.addf %44, %46 : vector<8x128xf32>
    %c0_24 = arith.constant 0 : index
    %c0_25 = arith.constant 0 : index
    %48 = vector.load %arg10[%c0_24, %c0_25] : memref<8x128xf32, #tpu.memory_space<vmem>>, vector<8x128xf32>
    tpu.vector_store %arg10[%c0_24, %c0_25], %47 {strides = array<i32>} : memref<8x128xf32, #tpu.memory_space<vmem>>, vector<8x128xf32>,
    return
  }
  func.func @transform_0(%arg0: i32) -> (i32, i32) {
    %c0_i32 = arith.constant 0 : i32
    %c0_i32_0 = arith.constant 0 : i32
    return %arg0, %c0_i32 : i32, i32
  }
  func.func @transform_1(%arg0: i32) -> (i32, i32) {
    %c0_i32 = arith.constant 0 : i32
    %c0_i32_0 = arith.constant 0 : i32
    return %arg0, %c0_i32 : i32, i32
  }
  func.func @transform_2(%arg0: i32) -> (i32, i32) {
    %c0_i32 = arith.constant 0 : i32
    %c0_i32_0 = arith.constant 0 : i32
    %c0_i32_1 = arith.constant 0 : i32
    return %c0_i32, %c0_i32_0 : i32, i32
  }
  func.func @transform_3(%arg0: i32) -> (i32, i32) {
    %c0_i32 = arith.constant 0 : i32
    %c0_i32_0 = arith.constant 0 : i32
    %c0_i32_1 = arith.constant 0 : i32
    return %c0_i32, %c0_i32_0 : i32, i32
  }
  func.func @transform_4(%arg0: i32) -> (i32, i32) {
    %c0_i32 = arith.constant 0 : i32
    %c0_i32_0 = arith.constant 0 : i32
    %c0_i32_1 = arith.constant 0 : i32
    return %c0_i32, %c0_i32_0 : i32, i32
  }
  func.func @transform_5(%arg0: i32) -> (i32, i32) {
    %c0_i32 = arith.constant 0 : i32
    %c0_i32_0 = arith.constant 0 : i32
    %c0_i32_1 = arith.constant 0 : i32
    return %c0_i32, %c0_i32_0 : i32, i32
  }
  func.func @transform_6(%arg0: i32) -> (i32, i32) {
    %c0_i32 = arith.constant 0 : i32
    %c0_i32_0 = arith.constant 0 : i32
    %c0_i32_1 = arith.constant 0 : i32
    return %c0_i32, %c0_i32_0 : i32, i32
  }
  func.func @transform_7(%arg0: i32) -> (i32, i32) {
    %c0_i32 = arith.constant 0 : i32
    %c0_i32_0 = arith.constant 0 : i32
    %c0_i32_1 = arith.constant 0 : i32
    return %c0_i32, %c0_i32_0 : i32, i32
  }
  func.func @transform_8(%arg0: i32) -> (i32, i32) {
    %c0_i32 = arith.constant 0 : i32
    %c0_i32_0 = arith.constant 0 : i32
    %c0_i32_1 = arith.constant 0 : i32
    return %c0_i32, %c0_i32_0 : i32, i32
  }
  func.func @transform_9(%arg0: i32) -> (i32, i32) {
    %c0_i32 = arith.constant 0 : i32
    %c0_i32_0 = arith.constant 0 : i32
    return %arg0, %c0_i32 : i32, i32
  }
}

</mosaic_0001>

<bundles_post_ra>
// kernel: d4pg_critic_forward.1
= control target key start
LH: loop header
LB: loop body
LE: loop exit
PB: predicated region body
PF: predicated region fallthrough
CT: control target
= control target key end

     0   :  { %v622_v2 = vmov 0   ;;  %vm72_vm0 = vcmask 261120   ;;  %s802_s0 = inlined_call_operand.vmem [shape: f32[8,32], index: 0, kind: input, shape index: {}]   ;;  %s803_s1 = inlined_call_operand.vmem [shape: f32[8,4], index: 1, kind: input, shape index: {}]   ;;  %s804_s2 = inlined_call_operand.vmem [shape: bf16[32,256], index: 2, kind: input, shape index: {}]   ;;  %s805_s3 = inlined_call_operand.vmem [shape: f32[1,256], index: 3, kind: input, shape index: {}]   ;;  %s806_s4 = inlined_call_operand.vmem [shape: bf16[256,128], index: 4, kind: input, shape index: {}]   ;;  %s807_s5 = inlined_call_operand.vmem [shape: f32[4,128], index: 5, kind: input, shape index: {}]   ;;  %s808_s6 = inlined_call_operand.vmem [shape: f32[1,128], index: 6, kind: input, shape index: {}]   ;;  %s809_s7 = inlined_call_operand.vmem [shape: bf16[128,128], index: 7, kind: input, shape index: {}]   ;;  %s810_s8 = inlined_call_operand.vmem [shape: f32[1,128], index: 8, kind: input, shape index: {}]   ;;  %s811_s9 = inlined_call_operand.hbm [shape: f32[8,128], index: 9, kind: output, shape index: {}]  }
   0x1   :  { %v568_v0 = vld [vmem:[%s804_s2 + $0x4] ss:$8 sps:$4 sm:$0xff]   ;;  %v570_v1 = vld [vmem:[%s804_s2] ss:$8 sps:$4 sm:$0xff]   ;;  %108 = vmatprep.mubr.bf16.mxu0 %v622_v2  ;;  %563 = vset.pattern.permute.xlu0 %v622_v2  ;;  %v571_v3 = vld [vmem:[%s804_s2 + $0x14] ss:$8 sps:$4 sm:$0xff]  }
   0x2   :  { %76 = vmatprep.subr.bf16.mxu0 %v568_v0  ;;  %v573_v4 = vld [vmem:[%s804_s2 + $0x10] ss:$8 sps:$4 sm:$0xff]   ;;  %v34_v5 = vld [vmem:[%s802_s0] sm:$0xff]  ;;  %v576_v8 = vld [vmem:[%s806_s4 + $0x48] sm:$0xff]  }
   0x3   :  { %77 = vmatpush1.bf16.msra.mxu0 %v570_v1  ;;  %v574_v6 = vld [vmem:[%s806_s4 + $0x40] sm:$0xff]   ;;  %v35_v9 = vpack.c.bf16 %v34_v5, %v34_v5  ;;  %v577_v10 = vld [vmem:[%s806_s4 + $0x8] sm:$0xff]   ;;  %v578_v11 = vld [vmem:[%s806_s4 + $0x50] sm:$0xff]  }
   0x4   :  { %78 = vmatprep.subr.bf16.mxu0 %v571_v3  ;;  %v575_v7 = vld [vmem:[%s806_s4] sm:$0xff]   ;;  %505 = vmatprep.subr.bf16.mxu1 %v574_v6  ;;  %v579_v12 = vld [vmem:[%s806_s4 + $0x10] sm:$0xff]   ;;  %v580_v13 = vld [vmem:[%s806_s4 + $0x58] sm:$0xff]  }
   0x5   :  { %506 = vmatpush3.bf16.msra.mxu1 %v575_v7  ;;  %v581_v14 = vld [vmem:[%s806_s4 + $0x18] sm:$0xff]   ;;  %v582_v15 = vld [vmem:[%s806_s4 + $0x60] sm:$0xff]   ;;  %v584_v17 = vld [vmem:[%s806_s4 + $0x68] sm:$0xff]  }
   0x6   :  { %507 = vmatprep.subr.bf16.mxu1 %v576_v8  ;;  %v583_v16 = vld [vmem:[%s806_s4 + $0x20] sm:$0xff]   ;;  %v585_v18 = vld [vmem:[%s806_s4 + $0x28] sm:$0xff]  }
   0x7   :  { %79 = vmatpush1.bf16.msra.mxu0 %v573_v4 }
   0x9   :  { %508 = vmatpush3.bf16.msra.mxu1 %v577_v10 }
   0xa   :  { %474 = vmatmul.mubr.msk.bf16.vlgmr.msra.gmra.mrb[0].mxu0 %vm72_vm0, %v35_v9  ;;  %509 = vmatprep.subr.bf16.mxu1 %v578_v11 }
   0xd   :  { %510 = vmatpush3.bf16.msra.mxu1 %v579_v12 }
   0xe   :  { %511 = vmatprep.subr.bf16.mxu1 %v580_v13 }
  0x11   :  { %512 = vmatpush3.bf16.msra.mxu1 %v581_v14 }
  0x12   :  { %513 = vmatprep.subr.bf16.mxu1 %v582_v15 }
  0x15   :  { %514 = vmatpush3.bf16.msra.mxu1 %v583_v16 }
  0x16   :  { %515 = vmatprep.subr.bf16.mxu1 %v584_v17 }
  0x17   :  { %14 = vsyncpa [#allocation3], 0  ;;  %v586_v19 = vld [vmem:[%s806_s4 + $0x70] sm:$0xff]   ;;  %v588_v21 = vld [vmem:[%s806_s4 + $0x78] sm:$0xff]   ;;  %v623_v25 = vmov 2   ;;  %v624_v26 = vmov 0.0   ;;  %v42_v32 = vlaneseq }
  0x18   :  { %v587_v20 = vld [vmem:[%s806_s4 + $0x30] sm:$0xff]   ;;  %v589_v22 = vld [vmem:[%s806_s4 + $0x38] sm:$0xff]   ;;  %v153_v23 = vld [vmem:[%s803_s1] sm:$0xff]  ;;  %565 = vset.pattern.permute.xlu1 %v623_v25  ;;  %536 = vmatprep.subr.bf16.mxu0 %v624_v26  ;;  %v625_v28 = vmov 1   ;;  %v626_v29 = vmov 3   ;;  %vm627_vm1 = vmmov 0  }
  0x19   :  { %516 = vmatpush3.bf16.msra.mxu1 %v585_v18  ;;  %v590_v24 = vld [vmem:[%s809_s7] sm:$0xff]   ;;  %157 = vperm.xlu0 %563, %v153_v23   ;;  %v591_v27 = vld [vmem:[%s809_s7 + $0x8] sm:$0xff]   ;;  %v592_v30 = vld [vmem:[%s809_s7 + $0x10] sm:$0xff]   ;;  %v43_v33 = vshrl.u32 %v42_v32, 7 }
  0x1a   :  { %517 = vmatprep.subr.bf16.mxu1 %v586_v19  ;;  %314 = vperm.xlu1 %565, %v153_v23   ;;  %v593_v31 = vld [vmem:[%s809_s7 + $0x18] sm:$0xff]   ;;  %v40_v35 = vld [vmem:[%s805_s3] sm:$0x3]  ;;  %v595_v50 = vld [vmem:[%s809_s7 + $0x28] sm:$0xff]  }
  0x1b   :  { %537 = vmatpush3.bf16.msra.mxu0 %v590_v24  ;;  %v44_v34 = vsub.s32 0, %v43_v33  ;;  %v48_v36 = vsub.s32 1, %v43_v33  ;;  %v594_v49 = vld [vmem:[%s809_s7 + $0x20] sm:$0xff]   ;;  %v596_v51 = vld [vmem:[%s809_s7 + $0x30] sm:$0xff]   ;;  %v597_v52 = vld [vmem:[%s809_s7 + $0x38] sm:$0xff]   ;;  %552 = vmatprep.mubr.msk.bf16.mxu0 %vm627_vm1, %v624_v26 }
  0x1c   :  { %538 = vmatprep.subr.bf16.mxu0 %v624_v26  ;;  %v475_v55 = vld [vmem:[%s807_s5] ss:$0 sm:$0xff]  ;;  %v492_v56 = vld [vmem:[%s807_s5 + $0x1] ss:$0 sm:$0xff]  ;;  %v493_v0 = vld [vmem:[%s807_s5 + $0x2] ss:$0 sm:$0xff] }
  0x1d   :  { %518 = vmatpush3.bf16.msra.mxu1 %v587_v20  ;;  %564 = vset.pattern.permute.xlu0 %v625_v28  ;;  %v45_v37 = vrot.slane %v40_v35, %v44_v34  ;;  %v49_v38 = vrot.slane %v40_v35, %v48_v36  ;;  %v494_v2 = vld [vmem:[%s807_s5 + $0x3] ss:$0 sm:$0xff]  ;;  %v495_v9 = vld [vmem:[%s808_s6] ss:$0 sm:$0xff]  ;;  %s628_s5 = smov [#allocation2]  }
  0x1e   :  { %519 = vmatprep.subr.bf16.mxu1 %v588_v21  ;;  %303 = vperm.xlu0 %564, %v153_v23   ;;  %v496_v14 = vld [vmem:[%s810_s8] ss:$0 sm:$0xff]  ;;  %s462_s10 = sshll.u32 %s628_s5, 4  ;;  %s463_s10 = int_to_ptr.vmem [resolvable:$true] %s462_s10 }
  0x1f   :  { %566 = vset.pattern.permute.xlu1 %v626_v29  ;;  %539 = vmatpush3.bf16.msra.mxu0 %v591_v27  ;;  %s598_s1 = scalar_lea.vmem %s463_s10, 128  ;;  %p603_p1 = scmp.lt.s32.totalorder %s463_s10, %s463_s10 }
  0x20   :  { %325 = vperm.xlu1 %566, %v153_v23   ;;  %540 = vmatprep.subr.bf16.mxu0 %v624_v26  ;;  %p599_p0 = scmp.ne.s32.totalorder %s463_s10, %s598_s1  ;;  %p604_p2 = scmp.lt.s32.totalorder %s598_s1, %s598_s1 }
  0x21   :  { %520 = vmatpush3.bf16.msra.mxu1 %v589_v22 }
  0x22   :  { %567 = vset.pattern.permute.xlu0 %v626_v29  ;;  %p605_p3 = por %p604_p2, %p603_p1 }
  0x23   :  { %541 = vmatpush3.bf16.msra.mxu0 %v592_v30 }
  0x24   :  { %542 = vmatprep.subr.bf16.mxu0 %v624_v26  ;;  %p606_p4 = pnand %p605_p3, %p599_p0 }
  0x27   :  { %543 = vmatpush3.bf16.msra.mxu0 %v593_v31 }
  0x28   :  { %544 = vmatprep.subr.bf16.mxu0 %v624_v26 }
  0x2b   :  { %545 = vmatpush3.bf16.msra.mxu0 %v594_v49 }
  0x2c   :  { %546 = vmatprep.subr.bf16.mxu0 %v624_v26 }
  0x2f   :  { %547 = vmatpush3.bf16.msra.mxu0 %v595_v50 }
  0x30   :  { %548 = vmatprep.subr.bf16.mxu0 %v624_v26 }
  0x33   :  { %549 = vmatpush3.bf16.msra.mxu0 %v596_v51 }
  0x34   :  { %550 = vmatprep.subr.bf16.mxu0 %v624_v26 }
  0x37   :  { %551 = vmatpush3.bf16.msra.mxu0 %v597_v52 }
  0x98   :  { %v158_v53 = vpop.permute.xlu0 %157 }
  0x99   :  { %v315_v54 = vpop.permute.xlu1 %314  ;;  %v164_v60 = vmul.f32 %v475_v55, %v158_v53 }
  0x9a   :  { %v321_v5 = vmul.f32 %v493_v0, %v315_v54 }
  0x9d   :  { %v304_v57 = vpop.permute.xlu0 %303 }
  0x9e   :  { %v310_v63 = vmul.f32 %v492_v56, %v304_v57 }
  0x9f   :  { %v326_v3 = vpop.permute.xlu1 %325 }
  0xa0   :  { %v332_v7 = vmul.f32 %v494_v2, %v326_v3 }
  0xdd   :  { %v110_v39 = vpop.f32.mrb[0].mxu0 }
  0xde   :  { %v111_v40 = vadd.f32 %v110_v39, %v45_v37  ;;  %v112_v41 = vpop.f32.mrb[1].mxu0 }
  0xdf   :  { %v113_v42 = vadd.f32 %v112_v41, %v49_v38  ;;  %v114_v43 = vpop.f32.mrb[2].mxu0 }
  0xe0   :  { %v117_v44 = vmax.f32 %v111_v40, 0.0  ;;  %v115_v45 = vpop.f32.mrb[3].mxu0 }
  0xe1   :  { %v118_v46 = vmax.f32 %v113_v42, 0.0 }
  0xe2   :  { %v119_v48 = vpack.c.bf16 %v117_v44, %v117_v44 }
  0xe3   :  { %v120_v47 = vpack.c.bf16 %v118_v46, %v118_v46 }
  0xe5   :  { %293 = vmatprep.mubr.bf16.mxu1 %v120_v47 }
  0xe6   :  { %294 = vmatmul.mubr.bf16.vlgmr.msra.gmra.mrb[0].mxu1 %v119_v48 }
 0x1b9   :  { %v521_v58 = vpop.f32.mrb[0].mxu1 }
 0x1ba   :  { %v522_v59 = vpop.f32.mrb[1].mxu1 }
 0x1bb   :  { %v523_v61 = vadd.f32 %v522_v59, %v521_v58  ;;  %v524_v62 = vpop.f32.mrb[2].mxu1 }
 0x1bc   :  { %v525_v1 = vpop.f32.mrb[3].mxu1 }
 0x1bd   :  { %v296_v4 = vadd.f32 %v523_v61, %v164_v60 }
 0x1bf   :  { %v311_v6 = vadd.f32 %v310_v63, %v296_v4 }
 0x1c1   :  { %v322_v8 = vadd.f32 %v321_v5, %v311_v6 }
 0x1c3   :  { %v333_v10 = vadd.f32 %v332_v7, %v322_v8 }
 0x1c5   :  { %v341_v11 = vadd.f32 %v495_v9, %v333_v10 }
 0x1c7   :  { %v342_v12 = vmax.f32 %v341_v11, 0.0 }
 0x1c9   :  { %v343_v13 = vpack.c.bf16 %v342_v12, %v342_v12 }
 0x1cb   :  { %553 = vmatmul.mubr.bf16.vlgmr.msra.gmra.mrb[4].mxu0 %v343_v13 }
 0x29e   :  { %v449_v15 = vpop.f32.mrb[4].mxu0 }
 0x29f   :  { %v450_v16 = vadd.f32 %v496_v14, %v449_v15  ;;  %v554_v17 = vpop.f32.mrb[5].mxu0 }
 0x2a0   :  { %v452_v18 = vpop.f32.mrb[6].mxu0 }
 0x2a1   :  { %455 = vst [vmem:[#allocation2] sm:$0xff] %v450_v16  ;;  %v555_v19 = vpop.f32.mrb[7].mxu0 }
 0x2a2   :  { %609 = shalt.err (!%p606_p4)
}
 0x2a3   :  { %s610_s8 = scalar_lea.hbm %s811_s9, 128 }
 0x2a4   :  { %p611_p5 = scmp.ne.s32.totalorder %s811_s9, %s610_s8  ;;  %p614_p6 = scmp.lt.u32.totalorder %s610_s8, %s811_s9 }
 0x2a6   :  { %p616_p7 = pnand %p614_p6, %p611_p5 }
 0x2a8   :  { %619 = shalt.err (!%p616_p7)
}
 0x2a9   :  { %465 = dma.vmem_to_hbm [thread:$0]  %s463_s10, 128, %s811_s9, [#allocation3]  }
 0x2aa   :  { %620 = dma.done.wait [#allocation3], 128  }
 0x2ab   :  { %621 = vsyncadd [#allocation3], 4294967168 }
 0x2ac   :  { %469 = vsyncpa [#allocation3], 1 }

</bundles_post_ra>
